<compile_context>
chip_gen: v5e
topology: v5e:2x2
jax: 0.10.0
libtpu: 0.0.40
codegen_flags: <defaults>
</compile_context>

<pallas_src>
import functools

import jax
import jax.numpy as jnp
from jax import lax
from jax.experimental import pallas as pl
from jax.experimental.pallas import tpu as pltpu


def _fit(dim, target):
    """Largest tile <= target that evenly divides dim (falls back to full dim)."""
    t = min(dim, target)
    return t if dim % t == 0 else dim


# ---------------------------------------------------------------------------
# Tiled linear kernel:  out = x @ w^T   (w stored (out_features, in_features))
# ---------------------------------------------------------------------------

def _linear_nt_kernel(x_ref, w_ref, o_ref, acc_ref):
    @pl.when(pl.program_id(2) == 0)
    def _init():
        acc_ref[...] = jnp.zeros_like(acc_ref)

    acc_ref[...] += lax.dot_general(
        x_ref[...], w_ref[...],
        (((1,), (1,)), ((), ())),              # contract last dims (NT matmul)
        preferred_element_type=jnp.float32)

    @pl.when(pl.program_id(2) == pl.num_programs(2) - 1)
    def _done():
        o_ref[...] = acc_ref[...].astype(o_ref.dtype)


def linear_nt(x, w, out_dtype, tm=256, tn=256, tk=512):
    M, K = x.shape
    N, K2 = w.shape
    assert K == K2
    tm, tn, tk = _fit(M, tm), _fit(N, tn), _fit(K, tk)
    grid = (M // tm, N // tn, K // tk)
    return pl.pallas_call(
        _linear_nt_kernel,
        grid=grid,
        in_specs=[
            pl.BlockSpec((tm, tk), lambda i, j, k: (i, k)),
            pl.BlockSpec((tn, tk), lambda i, j, k: (j, k)),
        ],
        out_specs=pl.BlockSpec((tm, tn), lambda i, j, k: (i, j)),
        out_shape=jax.ShapeDtypeStruct((M, N), out_dtype),
        scratch_shapes=[pltpu.VMEM((tm, tn), jnp.float32)],
        compiler_params=pltpu.CompilerParams(
            dimension_semantics=("parallel", "parallel", "arbitrary")),
    )(x, w)


# ---------------------------------------------------------------------------
# Fused attention kernel: scores + rel_shift + softmax + P@V per batch element
# ---------------------------------------------------------------------------

def _rel_shift_tile(bd):
    """Exact Transformer-XL rel-shift of a (Q, R) tile with Q == R.

    Reproduces the PyTorch zero-pad + flatten trick (including wrap-around
    values) using one strided lane roll + one sublane roll + a select.
    """
    q, r = bd.shape
    # c[i, j] = bd[i, (j - (i + 1)) mod R]
    c = pltpu.roll(bd, shift=1, axis=1, stride=1, stride_axis=0)
    # d[i, j] = c[(i + 1) mod Q, j]
    d = pltpu.roll(c, shift=q - 1, axis=0)
    row = lax.broadcasted_iota(jnp.int32, (q, r), 0)
    col = lax.broadcasted_iota(jnp.int32, (q, r), 1)
    return jnp.where(col <= row, c, jnp.where(col == row + 1, 0.0, d))


def _fused_attn_kernel(n_head, d_head, scale, approx_recip,
                       qkv_ref, rk_ref, rwb_ref, rrb_ref, o_ref):
    nd = n_head * d_head
    outs = []
    for h in range(n_head):
        lo, hi = h * d_head, (h + 1) * d_head
        q = qkv_ref[:, lo:hi]                      # (Q, dh)
        k = qkv_ref[:, nd + lo:nd + hi]            # (K, dh)
        v = qkv_ref[:, 2 * nd + lo:2 * nd + hi]    # (K, dh)
        rk = rk_ref[:, lo:hi]                      # (R, dh)

        rwb = rwb_ref[h:h + 1, :].astype(jnp.float32)   # (1, dh)
        rrb = rrb_ref[h:h + 1, :].astype(jnp.float32)

        qf = q.astype(jnp.float32)
        # fold 1/sqrt(d_head) into the query (VPU work on Q*dh, not Q*K)
        rw_q = ((qf + rwb) * scale).astype(q.dtype)
        rr_q = ((qf + rrb) * scale).astype(q.dtype)

        dn = (((1,), (1,)), ((), ()))              # contract d_head (x @ y^T)
        ac = lax.dot_general(rw_q, k, dn, preferred_element_type=jnp.float32)
        bd = lax.dot_general(rr_q, rk, dn, preferred_element_type=jnp.float32)

        s = ac + _rel_shift_tile(bd)               # (Q, K) f32, already scaled
        m = jnp.max(s, axis=-1, keepdims=True)
        p = jnp.exp(s - m)
        denom = jnp.sum(p, axis=-1, keepdims=True)
        if approx_recip:
            p = p * pl.reciprocal(denom, approx=True)
        else:
            p = p / denom

        out_h = jnp.dot(p.astype(v.dtype), v,
                        preferred_element_type=jnp.float32)   # (Q, dh)
        outs.append(out_h)

    # single lane-dense (Q, n_head*d_head) store
    o_ref[...] = jnp.concatenate(outs, axis=-1).astype(o_ref.dtype)


# ---------------------------------------------------------------------------
# Fused output projection + residual + LayerNorm (row tiled)
# ---------------------------------------------------------------------------

def _out_ln_kernel(eps, av_ref, wo_ref, res_ref, g_ref, b_ref, o_ref):
    attn_out = lax.dot_general(
        av_ref[...], wo_ref[...], (((1,), (1,)), ((), ())),
        preferred_element_type=jnp.float32)
    x = res_ref[...].astype(jnp.float32) + attn_out
    mu = jnp.mean(x, axis=-1, keepdims=True)
    xc = x - mu
    var = jnp.mean(xc * xc, axis=-1, keepdims=True)
    xn = xc * lax.rsqrt(var + eps)
    o_ref[...] = (xn * g_ref[...].astype(jnp.float32)
                  + b_ref[...].astype(jnp.float32)).astype(o_ref.dtype)


# ---------------------------------------------------------------------------
# Forward pass
# ---------------------------------------------------------------------------

def rel_partial_mha_forward(w, r, params, n_head, d_head,
                            layer_norm_epsilon=1e-5,
                            compute_dtype=jnp.bfloat16):
    qlen, bsz, d_model = w.shape
    rlen = r.shape[0]
    assert rlen == qlen, "TODO(synk): mems / rlen != qlen not implemented"
    nd = n_head * d_head
    scale = 1.0 / (d_head ** 0.5)
    cdt = compute_dtype

    # single (qlen,bsz)->(bsz,qlen) transpose so all kernel tiles are batch-major
    w_bt = jnp.transpose(w, (1, 0, 2))                 # (bsz, qlen, d_model)
    w2d = w_bt.reshape(bsz * qlen, d_model)            # f32 residual

    # --- projections (tiled, pipelined, bf16 MXU path) ---
    qkv = linear_nt(w2d.astype(cdt), params["W_qkv"].astype(cdt), out_dtype=cdt)
    rk = linear_nt(r.astype(cdt), params["W_r"].astype(cdt), out_dtype=cdt)
    qkv3 = qkv.reshape(bsz, qlen, 3 * nd)              # free reshape

    # --- fused scores + rel_shift + softmax + P@V ---
    attn = pl.pallas_call(
        functools.partial(_fused_attn_kernel, n_head, d_head, scale,
                          cdt != jnp.float32),
        grid=(bsz,),
        in_specs=[
            pl.BlockSpec((None, qlen, 3 * nd), lambda b: (b, 0, 0)),
            pl.BlockSpec((rlen, nd), lambda b: (0, 0)),
            pl.BlockSpec((n_head, d_head), lambda b: (0, 0)),
            pl.BlockSpec((n_head, d_head), lambda b: (0, 0)),
        ],
        out_specs=pl.BlockSpec((None, qlen, nd), lambda b: (b, 0, 0)),
        out_shape=jax.ShapeDtypeStruct((bsz, qlen, nd), cdt),
        compiler_params=pltpu.CompilerParams(
            dimension_semantics=("parallel",)),
    )(qkv3, rk, params["r_w_bias"], params["r_r_bias"])

    av2d = attn.reshape(bsz * qlen, nd)

    # --- output projection + residual + LayerNorm (row tiled) ---
    M = bsz * qlen
    tm = _fit(M, 128)
    out2d = pl.pallas_call(
        functools.partial(_out_ln_kernel, layer_norm_epsilon),
        grid=(M // tm,),
        in_specs=[
            pl.BlockSpec((tm, nd), lambda i: (i, 0)),
            pl.BlockSpec((d_model, nd), lambda i: (0, 0)),
            pl.BlockSpec((tm, d_model), lambda i: (i, 0)),
            pl.BlockSpec((1, d_model), lambda i: (0, 0)),
            pl.BlockSpec((1, d_model), lambda i: (0, 0)),
        ],
        out_specs=pl.BlockSpec((tm, d_model), lambda i: (i, 0)),
        out_shape=jax.ShapeDtypeStruct((M, d_model), jnp.float32),
        compiler_params=pltpu.CompilerParams(
            dimension_semantics=("parallel",)),
    )(av2d, params["W_o"].astype(cdt), w2d,
      params["ln_g"].reshape(1, d_model), params["ln_b"].reshape(1, d_model))

    return jnp.transpose(out2d.reshape(bsz, qlen, d_model), (1, 0, 2))


# ---------------------------------------------------------------------------
# Pure-JAX reference (mirrors the PyTorch forward, defaults path), f32 HIGHEST
# ---------------------------------------------------------------------------

def reference_forward(w, r, params, n_head, d_head, eps=1e-5):
    qlen, bsz, d_model = w.shape
    rlen = r.shape[0]
    nd = n_head * d_head
    scale = 1.0 / (d_head ** 0.5)
    hp = jax.lax.Precision.HIGHEST

    w_heads = jnp.einsum("qbm,hm->qbh", w, params["W_qkv"], precision=hp)
    r_head_k = jnp.einsum("rm,hm->rh", r, params["W_r"], precision=hp)

    w_head_q = w_heads[..., :nd].reshape(qlen, bsz, n_head, d_head)
    w_head_k = w_heads[..., nd:2 * nd].reshape(qlen, bsz, n_head, d_head)
    w_head_v = w_heads[..., 2 * nd:].reshape(qlen, bsz, n_head, d_head)
    r_head_k = r_head_k.reshape(rlen, n_head, d_head)

    AC = jnp.einsum("ibnd,jbnd->ijbn", w_head_q + params["r_w_bias"],
                    w_head_k, precision=hp)
    BD = jnp.einsum("ibnd,jnd->ijbn", w_head_q + params["r_r_bias"],
                    r_head_k, precision=hp)

    Q, R, B, N = BD.shape
    zero_pad = jnp.zeros((Q, 1, B, N), BD.dtype)
    x_padded = jnp.concatenate([zero_pad, BD], axis=1).reshape(R + 1, Q, B, N)
    BD = x_padded[1:].reshape(Q, R, B, N)

    attn_score = (AC + BD) * scale
    attn_prob = jax.nn.softmax(attn_score, axis=1)
    attn_vec = jnp.einsum("ijbn,jbnd->ibnd", attn_prob, w_head_v, precision=hp)
    attn_vec = attn_vec.reshape(qlen, bsz, nd)
    attn_out = jnp.einsum("qbh,mh->qbm", attn_vec, params["W_o"], precision=hp)

    x = w + attn_out
    mu = x.mean(-1, keepdims=True)
    var = ((x - mu) ** 2).mean(-1, keepdims=True)
    return (x - mu) / jnp.sqrt(var + eps) * params["ln_g"] + params["ln_b"]


# ---------------------------------------------------------------------------

if __name__ == "__main__":
    n_head, d_head, d_model = 4, 32, 128
    qlen, bsz = 128, 2
    rlen = qlen  # no mems -> klen == qlen == rlen

    key = jax.random.PRNGKey(0)
    ks = jax.random.split(key, 9)
    params = {
        "W_qkv": 0.05 * jax.random.normal(ks[0], (3 * n_head * d_head, d_model), jnp.float32),
        "W_r":   0.05 * jax.random.normal(ks[1], (n_head * d_head, d_model), jnp.float32),
        "W_o":   0.05 * jax.random.normal(ks[2], (d_model, n_head * d_head), jnp.float32),
        "r_w_bias": 0.05 * jax.random.normal(ks[3], (n_head, d_head), jnp.float32),
        "r_r_bias": 0.05 * jax.random.normal(ks[4], (n_head, d_head), jnp.float32),
        "ln_g": 1.0 + 0.1 * jax.random.normal(ks[5], (d_model,), jnp.float32),
        "ln_b": 0.1 * jax.random.normal(ks[6], (d_model,), jnp.float32),
    }
    w = jax.random.normal(ks[7], (qlen, bsz, d_model), jnp.float32)
    r = jax.random.normal(ks[8], (rlen, d_model), jnp.float32)

    ref = reference_forward(w, r, params, n_head, d_head)

    # f32 path: tight check of the fused-kernel semantics (rel-shift, softmax, LN)
    out_f32 = rel_partial_mha_forward(w, r, params, n_head, d_head,
                                      compute_dtype=jnp.float32)
    out_f32 = jax.block_until_ready(out_f32)
    assert out_f32.shape == (qlen, bsz, d_model)
    err_f32 = float(jnp.max(jnp.abs(out_f32 - ref)))
    assert err_f32 < 1e-3, f"f32 path mismatch vs reference: {err_f32}"

    # bf16 MXU path (performance configuration)
    out_bf16 = rel_partial_mha_forward(w, r, params, n_head, d_head,
                                       compute_dtype=jnp.bfloat16)
    out_bf16 = jax.block_until_ready(out_bf16)
    assert out_bf16.shape == (qlen, bsz, d_model)
    err_bf16 = float(jnp.max(jnp.abs(out_bf16 - ref)))
    assert err_bf16 < 2e-2, f"bf16 path mismatch vs reference: {err_bf16}"

    print("KERNEL_OK")
</pallas_src>

<mosaic_0001>
module attributes {stable_mosaic.version = 11 : i64} {
  func.func @_linear_nt_kernel(%arg0: i32, %arg1: i32, %arg2: i32, %arg3: memref<256x128xf32, #tpu.memory_space<vmem>>, %arg4: memref<384x128xf32, #tpu.memory_space<vmem>>, %arg5: memref<256x384xf32, #tpu.memory_space<vmem>>, %arg6: memref<256x384xf32, #tpu.memory_space<vmem>>) attributes {dimension_semantics = [#tpu.dimension_semantics<parallel>, #tpu.dimension_semantics<parallel>, #tpu.dimension_semantics<arbitrary>], iteration_bounds = array<i64: 1, 1, 1>, scalar_prefetch = 0 : i64, scratch_operands = 1 : i64, tpu.core_type = #tpu.core_type<tc>, window_params = [{transform_indices = @transform_0, window_bounds = array<i64: 256, 128>}, {transform_indices = @transform_1, window_bounds = array<i64: 384, 128>}, {transform_indices = @transform_2, window_bounds = array<i64: 256, 384>}]} {
    %c0_i32 = arith.constant 0 : i32
    %0 = arith.cmpi eq, %arg2, %c0_i32 : i32
    %1 = arith.extui %0 : i1 to i32
    %c0_i32_0 = arith.constant 0 : i32
    %2 = arith.cmpi ne, %1, %c0_i32_0 : i32
    scf.if %2 {
      %cst_10 = arith.constant 0.000000e+00 : f32
      %12 = vector.broadcast %cst_10 : f32 to vector<256x384xf32>
      %c0_11 = arith.constant 0 : index
      %c0_12 = arith.constant 0 : index
      %13 = vector.load %arg6[%c0_11, %c0_12] : memref<256x384xf32, #tpu.memory_space<vmem>>, vector<256x384xf32>
      tpu.vector_store %arg6[%c0_11, %c0_12], %12 {strides = array<i32>} : memref<256x384xf32, #tpu.memory_space<vmem>>, vector<256x384xf32>,
    } else {
    }
    %c0 = arith.constant 0 : index
    %c0_1 = arith.constant 0 : index
    %3 = vector.load %arg6[%c0, %c0_1] : memref<256x384xf32, #tpu.memory_space<vmem>>, vector<256x384xf32>
    %c0_2 = arith.constant 0 : index
    %c0_3 = arith.constant 0 : index
    %4 = vector.load %arg3[%c0_2, %c0_3] : memref<256x128xf32, #tpu.memory_space<vmem>>, vector<256x128xf32>
    %c0_4 = arith.constant 0 : index
    %c0_5 = arith.constant 0 : index
    %5 = vector.load %arg4[%c0_4, %c0_5] : memref<384x128xf32, #tpu.memory_space<vmem>>, vector<384x128xf32>
    %cst = arith.constant dense<0.000000e+00> : vector<256x384xf32>
    %6 = tpu.matmul %4, %5, %cst {dimension_numbers = #tpu.dot_dimension_numbers<[1], [1], [0], [0], [0, 0, 1, 0], [], []>} : vector<256x128xf32>, vector<384x128xf32>, vector<256x384xf32> -> vector<256x384xf32>
    %7 = arith.addf %3, %6 : vector<256x384xf32>
    %c0_6 = arith.constant 0 : index
    %c0_7 = arith.constant 0 : index
    %8 = vector.load %arg6[%c0_6, %c0_7] : memref<256x384xf32, #tpu.memory_space<vmem>>, vector<256x384xf32>
    tpu.vector_store %arg6[%c0_6, %c0_7], %7 {strides = array<i32>} : memref<256x384xf32, #tpu.memory_space<vmem>>, vector<256x384xf32>,
    %c0_i32_8 = arith.constant 0 : i32
    %9 = arith.cmpi eq, %arg2, %c0_i32_8 : i32
    %10 = arith.extui %9 : i1 to i32
    %c0_i32_9 = arith.constant 0 : i32
    %11 = arith.cmpi ne, %10, %c0_i32_9 : i32
    scf.if %11 {
      %c0_10 = arith.constant 0 : index
      %c0_11 = arith.constant 0 : index
      %12 = vector.load %arg6[%c0_10, %c0_11] : memref<256x384xf32, #tpu.memory_space<vmem>>, vector<256x384xf32>
      %c0_12 = arith.constant 0 : index
      %c0_13 = arith.constant 0 : index
      %13 = vector.load %arg5[%c0_12, %c0_13] : memref<256x384xf32, #tpu.memory_space<vmem>>, vector<256x384xf32>
      tpu.vector_store %arg5[%c0_12, %c0_13], %12 {strides = array<i32>} : memref<256x384xf32, #tpu.memory_space<vmem>>, vector<256x384xf32>,
    } else {
    }
    return
  }
  func.func @transform_0(%arg0: i32, %arg1: i32, %arg2: i32) -> (i32, i32) {
    %c0_i32 = arith.constant 0 : i32
    return %arg0, %arg2 : i32, i32
  }
  func.func @transform_1(%arg0: i32, %arg1: i32, %arg2: i32) -> (i32, i32) {
    %c0_i32 = arith.constant 0 : i32
    return %arg1, %arg2 : i32, i32
  }
  func.func @transform_2(%arg0: i32, %arg1: i32, %arg2: i32) -> (i32, i32) {
    %c0_i32 = arith.constant 0 : i32
    return %arg0, %arg1 : i32, i32
  }
}

</mosaic_0001>

<bundles_post_ra>
// kernel: tpu_custom_call.1
= control target key start
LH: loop header
LB: loop body
LE: loop exit
PB: predicated region body
PF: predicated region fallthrough
CT: control target
= control target key end

     0   :  { %7 = vsyncpa [#allocation4], 0  ;;  %s1398_s0 = inlined_call_operand.hbm [shape: f32[256,128], index: 0, kind: input, shape index: {}]   ;;  %s1399_s1 = inlined_call_operand.hbm [shape: f32[384,128], index: 1, kind: input, shape index: {}]   ;;  %s1400_s2 = inlined_call_operand.hbm [shape: f32[256,384], index: 2, kind: output, shape index: {}]  }
   0x1   :  { %8 = vsyncpa [#allocation7], 0 }
   0x2   :  { %9 = vsyncpa [#allocation5], 0  ;;  %s14_s11 = sshll.u32 %s1398_s0, 4  ;;  %s1199_s12 = smov [#allocation3]   ;;  %s15_s11 = int_to_ptr.hbm [resolvable:$true] %s14_s11 }
   0x3   :  { %s16_s13 = sshll.u32 %s1199_s12, 4  ;;  %s27_s16 = sshll.u32 %s1399_s1, 4  ;;  %s17_s13 = int_to_ptr.vmem [resolvable:$true] %s16_s13  ;;  %s28_s16 = int_to_ptr.hbm [resolvable:$true] %s27_s16 }
   0x4   :  { %s1200_s17 = smov 128   ;;  %s1201_s18 = smov 8  }
   0x5   :  { %22 = dma.hbm_to_vmem [thread:$0]  %s15_s11, 4096, %s17_s13, [#allocation4], %s1200_s17, %s1200_s17, %s1201_s18  }
   0x6   :  { %s1202_s19 = smov [#allocation6]  }
   0x7   :  { %s29_s20 = sshll.u32 %s1202_s19, 4  ;;  %s30_s20 = int_to_ptr.vmem [resolvable:$true] %s29_s20 }
   0x8   :  { %35 = dma.hbm_to_vmem [thread:$0]  %s28_s16, 6144, %s30_s20, [#allocation7], %s1200_s17, %s1200_s17, %s1201_s18  }
   0x9   :  { %1193 = dma.done.wait [#allocation4], 4096  }
   0xa   :  { %1194 = vsyncadd [#allocation4], 4294963200 }
   0xb   :  { %1195 = dma.done.wait [#allocation7], 6144  }
   0xc   :  { %1196 = vsyncadd [#allocation7], 4294961152  ;;  %v287_v0 = vld [vmem:[#allocation6 + $0x78] sm:$0xff]  ;;  %v286_v3 = vld [vmem:[#allocation6 + $0x70] sm:$0xff]  ;;  %s1203_s0 = smov [#allocation8]   ;;  %s1052_s23 = sshll.u32 %s1400_s2, 4  ;;  %s1053_s23 = int_to_ptr.hbm [resolvable:$true] %s1052_s23 }
   0xd   :  { %v1227_v1 = vld [vmem:[#allocation6 + $0x178] sm:$0xff]  ;;  %1066 = vmatpush.xpose.msra.mxu3 %v287_v0  ;;  %v1232_v4 = vld [vmem:[#allocation6 + $0x170] sm:$0xff]  ;;  %320 = vmatpush.xpose.msra.mxu0 %v287_v0  ;;  %v285_v6 = vld [vmem:[#allocation6 + $0x68] sm:$0xff]  ;;  %s1050_s1 = sshll.u32 %s1203_s0, 4  ;;  %s1204_s24 = smov 384   ;;  %s1051_s1 = int_to_ptr.vmem [resolvable:$true] %s1050_s1 }
   0xe   :  { %546 = vmatpush.xpose.msra.mxu2 %v1227_v1  ;;  %v1230_v2 = vld [vmem:[#allocation6 + $0xf8] sm:$0xff]  ;;  %v1235_v5 = vld [vmem:[#allocation6 + $0xf0] sm:$0xff]  ;;  %v1238_v7 = vld [vmem:[#allocation6 + $0x168] sm:$0xff]  ;;  %s1205_s25 = smov 24  }
   0xf   :  { %433 = vmatpush.xpose.msra.mxu1 %v1230_v2  ;;  %v1241_v8 = vld [vmem:[#allocation6 + $0xe8] sm:$0xff]  ;;  %v284_v9 = vld [vmem:[#allocation6 + $0x60] sm:$0xff]  ;;  %v283_v12 = vld [vmem:[#allocation6 + $0x58] sm:$0xff] }
  0x10   :  { %v1244_v10 = vld [vmem:[#allocation6 + $0x160] sm:$0xff]  ;;  %v1250_v13 = vld [vmem:[#allocation6 + $0x158] sm:$0xff]  ;;  %v282_v15 = vld [vmem:[#allocation6 + $0x50] sm:$0xff] }
  0x11   :  { %1067 = vmatpush.xpose.msra.mxu3 %v286_v3  ;;  %321 = vmatpush.xpose.msra.mxu0 %v286_v3  ;;  %v1247_v11 = vld [vmem:[#allocation6 + $0xe0] sm:$0xff]  ;;  %v1253_v14 = vld [vmem:[#allocation6 + $0xd8] sm:$0xff]  ;;  %v1256_v16 = vld [vmem:[#allocation6 + $0x150] sm:$0xff] }
  0x12   :  { %547 = vmatpush.xpose.msra.mxu2 %v1232_v4  ;;  %v1259_v17 = vld [vmem:[#allocation6 + $0xd0] sm:$0xff]  ;;  %v281_v18 = vld [vmem:[#allocation6 + $0x48] sm:$0xff]  ;;  %v280_v21 = vld [vmem:[#allocation6 + $0x40] sm:$0xff] }
  0x13   :  { %434 = vmatpush.xpose.msra.mxu1 %v1235_v5  ;;  %v1262_v19 = vld [vmem:[#allocation6 + $0x148] sm:$0xff]  ;;  %v1268_v22 = vld [vmem:[#allocation6 + $0x140] sm:$0xff]  ;;  %v279_v24 = vld [vmem:[#allocation6 + $0x38] sm:$0xff] }
  0x14   :  { %v1265_v20 = vld [vmem:[#allocation6 + $0xc8] sm:$0xff]  ;;  %v1271_v23 = vld [vmem:[#allocation6 + $0xc0] sm:$0xff]  ;;  %v1274_v25 = vld [vmem:[#allocation6 + $0x138] sm:$0xff] }
  0x15   :  { %1068 = vmatpush.xpose.msra.mxu3 %v285_v6  ;;  %322 = vmatpush.xpose.msra.mxu0 %v285_v6  ;;  %v1277_v26 = vld [vmem:[#allocation6 + $0xb8] sm:$0xff]  ;;  %v278_v27 = vld [vmem:[#allocation6 + $0x30] sm:$0xff]  ;;  %v277_v30 = vld [vmem:[#allocation6 + $0x28] sm:$0xff] }
  0x16   :  { %548 = vmatpush.xpose.msra.mxu2 %v1238_v7  ;;  %v1280_v28 = vld [vmem:[#allocation6 + $0x130] sm:$0xff]  ;;  %v1286_v31 = vld [vmem:[#allocation6 + $0x128] sm:$0xff]  ;;  %v276_v33 = vld [vmem:[#allocation6 + $0x20] sm:$0xff] }
  0x17   :  { %435 = vmatpush.xpose.msra.mxu1 %v1241_v8  ;;  %v1283_v29 = vld [vmem:[#allocation6 + $0xb0] sm:$0xff]  ;;  %v1289_v32 = vld [vmem:[#allocation6 + $0xa8] sm:$0xff]  ;;  %v1292_v34 = vld [vmem:[#allocation6 + $0x120] sm:$0xff] }
  0x18   :  { %v1295_v35 = vld [vmem:[#allocation6 + $0xa0] sm:$0xff]  ;;  %v275_v36 = vld [vmem:[#allocation6 + $0x18] sm:$0xff]  ;;  %v274_v39 = vld [vmem:[#allocation6 + $0x10] sm:$0xff] }
  0x19   :  { %1069 = vmatpush.xpose.msra.mxu3 %v284_v9  ;;  %323 = vmatpush.xpose.msra.mxu0 %v284_v9  ;;  %v1298_v37 = vld [vmem:[#allocation6 + $0x118] sm:$0xff]  ;;  %v1304_v40 = vld [vmem:[#allocation6 + $0x110] sm:$0xff]  ;;  %v273_v42 = vld [vmem:[#allocation6 + $0x8] sm:$0xff] }
  0x1a   :  { %549 = vmatpush.xpose.msra.mxu2 %v1244_v10  ;;  %v1301_v38 = vld [vmem:[#allocation6 + $0x98] sm:$0xff]  ;;  %v1307_v41 = vld [vmem:[#allocation6 + $0x90] sm:$0xff]  ;;  %v1310_v43 = vld [vmem:[#allocation6 + $0x108] sm:$0xff] }
  0x1b   :  { %436 = vmatpush.xpose.msra.mxu1 %v1247_v11  ;;  %v1313_v44 = vld [vmem:[#allocation6 + $0x88] sm:$0xff]  ;;  %v272_v45 = vld [vmem:[#allocation6] sm:$0xff]  ;;  %v1333_v52 = vld [vmem:[#allocation3 + $0xd0] sm:$0xff] }
  0x1c   :  { %v1316_v46 = vld [vmem:[#allocation6 + $0x100] sm:$0xff]  ;;  %v1328_v50 = vld [vmem:[#allocation3 + $0xc8] sm:$0xff]  ;;  %v242_v53 = vld [vmem:[#allocation3 + $0x10] sm:$0xff] }
  0x1d   :  { %1070 = vmatpush.xpose.msra.mxu3 %v283_v12  ;;  %324 = vmatpush.xpose.msra.mxu0 %v283_v12  ;;  %v1319_v47 = vld [vmem:[#allocation6 + $0x80] sm:$0xff]  ;;  %v241_v51 = vld [vmem:[#allocation3 + $0x8] sm:$0xff]  ;;  %v1338_v54 = vld [vmem:[#allocation3 + $0xd8] sm:$0xff] }
  0x1e   :  { %550 = vmatpush.xpose.msra.mxu2 %v1250_v13  ;;  %v1322_v48 = vld [vmem:[#allocation3 + $0xc0] sm:$0xff]  ;;  %v243_v55 = vld [vmem:[#allocation3 + $0x18] sm:$0xff]  ;;  %v1348_v58 = vld [vmem:[#allocation3 + $0xe8] sm:$0xff] }
  0x1f   :  { %437 = vmatpush.xpose.msra.mxu1 %v1253_v14  ;;  %v240_v49 = vld [vmem:[#allocation3] sm:$0xff]  ;;  %v245_v59 = vld [vmem:[#allocation3 + $0x28] sm:$0xff]  ;;  %v1353_v60 = vld [vmem:[#allocation3 + $0xf0] sm:$0xff] }
  0x20   :  { %v1343_v56 = vld [vmem:[#allocation3 + $0xe0] sm:$0xff]  ;;  %v246_v61 = vld [vmem:[#allocation3 + $0x30] sm:$0xff]  ;;  %v1358_v62 = vld [vmem:[#allocation3 + $0xf8] sm:$0xff] }
  0x21   :  { %1071 = vmatpush.xpose.msra.mxu3 %v282_v15  ;;  %325 = vmatpush.xpose.msra.mxu0 %v282_v15  ;;  %v244_v57 = vld [vmem:[#allocation3 + $0x20] sm:$0xff]  ;;  %v247_v63 = vld [vmem:[#allocation3 + $0x38] sm:$0xff]  ;;  %v254_v6 = vld [vmem:[#allocation3 + $0x70] sm:$0xff] }
  0x22   :  { %551 = vmatpush.xpose.msra.mxu2 %v1256_v16  ;;  %v248_v0 = vld [vmem:[#allocation3 + $0x40] sm:$0xff]  ;;  %v251_v3 = vld [vmem:[#allocation3 + $0x58] sm:$0xff] }
  0x23   :  { %438 = vmatpush.xpose.msra.mxu1 %v1259_v17 }
  0x25   :  { %1072 = vmatpush.xpose.msra.mxu3 %v281_v18  ;;  %326 = vmatpush.xpose.msra.mxu0 %v281_v18  ;;  %v258_v18 = vld [vmem:[#allocation3 + $0x90] sm:$0xff] }
  0x26   :  { %552 = vmatpush.xpose.msra.mxu2 %v1262_v19 }
  0x27   :  { %439 = vmatpush.xpose.msra.mxu1 %v1265_v20 }
  0x29   :  { %1073 = vmatpush.xpose.msra.mxu3 %v280_v21  ;;  %327 = vmatpush.xpose.msra.mxu0 %v280_v21 }
  0x2a   :  { %553 = vmatpush.xpose.msra.mxu2 %v1268_v22 }
  0x2b   :  { %440 = vmatpush.xpose.msra.mxu1 %v1271_v23 }
  0x2d   :  { %1074 = vmatpush.xpose.msra.mxu3 %v279_v24  ;;  %328 = vmatpush.xpose.msra.mxu0 %v279_v24 }
  0x2e   :  { %554 = vmatpush.xpose.msra.mxu2 %v1274_v25 }
  0x2f   :  { %441 = vmatpush.xpose.msra.mxu1 %v1277_v26 }
  0x31   :  { %1075 = vmatpush.xpose.msra.mxu3 %v278_v27  ;;  %329 = vmatpush.xpose.msra.mxu0 %v278_v27 }
  0x32   :  { %555 = vmatpush.xpose.msra.mxu2 %v1280_v28 }
  0x33   :  { %442 = vmatpush.xpose.msra.mxu1 %v1283_v29 }
  0x35   :  { %1076 = vmatpush.xpose.msra.mxu3 %v277_v30  ;;  %330 = vmatpush.xpose.msra.mxu0 %v277_v30 }
  0x36   :  { %556 = vmatpush.xpose.msra.mxu2 %v1286_v31 }
  0x37   :  { %443 = vmatpush.xpose.msra.mxu1 %v1289_v32 }
  0x39   :  { %1077 = vmatpush.xpose.msra.mxu3 %v276_v33  ;;  %331 = vmatpush.xpose.msra.mxu0 %v276_v33  ;;  %v261_v33 = vld [vmem:[#allocation3 + $0xa8] sm:$0xff] }
  0x3a   :  { %557 = vmatpush.xpose.msra.mxu2 %v1292_v34 }
  0x3b   :  { %444 = vmatpush.xpose.msra.mxu1 %v1295_v35 }
  0x3d   :  { %1078 = vmatpush.xpose.msra.mxu3 %v275_v36  ;;  %332 = vmatpush.xpose.msra.mxu0 %v275_v36 }
  0x3e   :  { %558 = vmatpush.xpose.msra.mxu2 %v1298_v37 }
  0x3f   :  { %445 = vmatpush.xpose.msra.mxu1 %v1301_v38 }
  0x41   :  { %1079 = vmatpush.xpose.msra.mxu3 %v274_v39  ;;  %333 = vmatpush.xpose.msra.mxu0 %v274_v39 }
  0x42   :  { %559 = vmatpush.xpose.msra.mxu2 %v1304_v40 }
  0x43   :  { %446 = vmatpush.xpose.msra.mxu1 %v1307_v41 }
  0x45   :  { %1080 = vmatpush.xpose.msra.mxu3 %v273_v42  ;;  %334 = vmatpush.xpose.msra.mxu0 %v273_v42 }
  0x46   :  { %560 = vmatpush.xpose.msra.mxu2 %v1310_v43 }
  0x47   :  { %447 = vmatpush.xpose.msra.mxu1 %v1313_v44 }
  0x49   :  { %1081 = vmatpush.xpose.msra.mxu3 %v272_v45  ;;  %335 = vmatpush.xpose.msra.mxu0 %v272_v45 }
  0x4a   :  { %561 = vmatpush.xpose.msra.mxu2 %v1316_v46 }
  0x4b   :  { %448 = vmatpush.xpose.msra.mxu1 %v1319_v47 }
  0x4c   :  { %408 = vmatmul.f32.vlgmr.msra.gmra.mxu3 %v1322_v48  ;;  %336 = vmatmul.f32.vlgmr.msra.gmra.mxu0 %v240_v49 }
  0x4d   :  { %1082 = vmatpush.xpose.msrb.mxu3 %v1230_v2  ;;  %562 = vmatmul.f32.vlgmr.msra.gmra.mxu2 %v240_v49  ;;  %v249_v2 = vld [vmem:[#allocation3 + $0x48] sm:$0xff] }
  0x4e   :  { %449 = vmatmul.f32.vlgmr.msra.gmra.mxu1 %v240_v49 }
  0x51   :  { %1083 = vmatpush.xpose.msrb.mxu3 %v1235_v5  ;;  %v253_v5 = vld [vmem:[#allocation3 + $0x68] sm:$0xff] }
  0x54   :  { %411 = vmatmul.f32.gmra.mxu3 %v1328_v50  ;;  %339 = vmatmul.f32.gmra.mxu0 %v241_v51 }
  0x55   :  { %1084 = vmatpush.xpose.msrb.mxu3 %v1241_v8  ;;  %565 = vmatmul.f32.gmra.mxu2 %v241_v51  ;;  %v256_v8 = vld [vmem:[#allocation3 + $0x80] sm:$0xff] }
  0x56   :  { %452 = vmatmul.f32.gmra.mxu1 %v241_v51 }
  0x59   :  { %1085 = vmatpush.xpose.msrb.mxu3 %v1247_v11 }
  0x5c   :  { %414 = vmatmul.f32.gmra.mxu3 %v1333_v52  ;;  %342 = vmatmul.f32.gmra.mxu0 %v242_v53 }
  0x5d   :  { %1086 = vmatpush.xpose.msrb.mxu3 %v1253_v14  ;;  %568 = vmatmul.f32.gmra.mxu2 %v242_v53 }
  0x5e   :  { %455 = vmatmul.f32.gmra.mxu1 %v242_v53 }
  0x61   :  { %1087 = vmatpush.xpose.msrb.mxu3 %v1259_v17 }
  0x64   :  { %417 = vmatmul.f32.gmra.mxu3 %v1338_v54  ;;  %345 = vmatmul.f32.gmra.mxu0 %v243_v55 }
  0x65   :  { %1088 = vmatpush.xpose.msrb.mxu3 %v1265_v20  ;;  %571 = vmatmul.f32.gmra.mxu2 %v243_v55 }
  0x66   :  { %458 = vmatmul.f32.gmra.mxu1 %v243_v55 }
  0x69   :  { %1089 = vmatpush.xpose.msrb.mxu3 %v1271_v23  ;;  %v259_v23 = vld [vmem:[#allocation3 + $0x98] sm:$0xff] }
  0x6c   :  { %420 = vmatmul.f32.gmra.mxu3 %v1343_v56  ;;  %348 = vmatmul.f32.gmra.mxu0 %v244_v57 }
  0x6d   :  { %1090 = vmatpush.xpose.msrb.mxu3 %v1277_v26  ;;  %574 = vmatmul.f32.gmra.mxu2 %v244_v57 }
  0x6e   :  { %461 = vmatmul.f32.gmra.mxu1 %v244_v57 }
  0x71   :  { %1091 = vmatpush.xpose.msrb.mxu3 %v1283_v29 }
  0x74   :  { %423 = vmatmul.f32.gmra.mxu3 %v1348_v58  ;;  %351 = vmatmul.f32.gmra.mxu0 %v245_v59 }
  0x75   :  { %1092 = vmatpush.xpose.msrb.mxu3 %v1289_v32  ;;  %577 = vmatmul.f32.gmra.mxu2 %v245_v59 }
  0x76   :  { %464 = vmatmul.f32.gmra.mxu1 %v245_v59 }
  0x79   :  { %1093 = vmatpush.xpose.msrb.mxu3 %v1295_v35 }
  0x7c   :  { %426 = vmatmul.f32.gmra.mxu3 %v1353_v60  ;;  %354 = vmatmul.f32.gmra.mxu0 %v246_v61 }
  0x7d   :  { %1094 = vmatpush.xpose.msrb.mxu3 %v1301_v38  ;;  %580 = vmatmul.f32.gmra.mxu2 %v246_v61  ;;  %v262_v38 = vld [vmem:[#allocation3 + $0xb0] sm:$0xff] }
  0x7e   :  { %467 = vmatmul.f32.gmra.mxu1 %v246_v61 }
  0x81   :  { %1095 = vmatpush.xpose.msrb.mxu3 %v1307_v41 }
  0x84   :  { %429 = vmatmul.f32.gmra.mxu3 %v1358_v62  ;;  %357 = vmatmul.f32.gmra.mxu0 %v247_v63 }
  0x85   :  { %1096 = vmatpush.xpose.msrb.mxu3 %v1313_v44  ;;  %583 = vmatmul.f32.gmra.mxu2 %v247_v63 }
  0x86   :  { %470 = vmatmul.f32.gmra.mxu1 %v247_v63 }
  0x89   :  { %1097 = vmatpush.xpose.msrb.mxu3 %v1319_v47 }
  0x8c   :  { %521 = vmatmul.f32.vlgmr.msrb.gmra.mxu3 %v1322_v48  ;;  %360 = vmatmul.f32.gmra.mxu0 %v248_v0 }
  0x8d   :  { %1098 = vmatpush.xpose.msra.mxu3 %v1227_v1  ;;  %586 = vmatmul.f32.gmra.mxu2 %v248_v0  ;;  %v250_v1 = vld [vmem:[#allocation3 + $0x50] sm:$0xff] }
  0x8e   :  { %473 = vmatmul.f32.gmra.mxu1 %v248_v0 }
  0x91   :  { %1099 = vmatpush.xpose.msra.mxu3 %v1232_v4  ;;  %v252_v4 = vld [vmem:[#allocation3 + $0x60] sm:$0xff] }
  0x94   :  { %524 = vmatmul.f32.gmra.mxu3 %v1328_v50  ;;  %363 = vmatmul.f32.gmra.mxu0 %v249_v2 }
  0x95   :  { %1100 = vmatpush.xpose.msra.mxu3 %v1238_v7  ;;  %589 = vmatmul.f32.gmra.mxu2 %v249_v2  ;;  %v255_v7 = vld [vmem:[#allocation3 + $0x78] sm:$0xff] }
  0x96   :  { %476 = vmatmul.f32.gmra.mxu1 %v249_v2 }
  0x99   :  { %1101 = vmatpush.xpose.msra.mxu3 %v1244_v10 }
  0x9c   :  { %527 = vmatmul.f32.gmra.mxu3 %v1333_v52  ;;  %366 = vmatmul.f32.gmra.mxu0 %v250_v1 }
  0x9d   :  { %1102 = vmatpush.xpose.msra.mxu3 %v1250_v13  ;;  %592 = vmatmul.f32.gmra.mxu2 %v250_v1  ;;  %v257_v13 = vld [vmem:[#allocation3 + $0x88] sm:$0xff] }
  0x9e   :  { %479 = vmatmul.f32.gmra.mxu1 %v250_v1 }
  0xa1   :  { %1103 = vmatpush.xpose.msra.mxu3 %v1256_v16 }
  0xa4   :  { %530 = vmatmul.f32.gmra.mxu3 %v1338_v54  ;;  %369 = vmatmul.f32.gmra.mxu0 %v251_v3 }
  0xa5   :  { %1104 = vmatpush.xpose.msra.mxu3 %v1262_v19  ;;  %595 = vmatmul.f32.gmra.mxu2 %v251_v3 }
  0xa6   :  { %482 = vmatmul.f32.gmra.mxu1 %v251_v3 }
  0xa9   :  { %1105 = vmatpush.xpose.msra.mxu3 %v1268_v22 }
  0xac   :  { %533 = vmatmul.f32.gmra.mxu3 %v1343_v56  ;;  %372 = vmatmul.f32.gmra.mxu0 %v252_v4 }
  0xad   :  { %1106 = vmatpush.xpose.msra.mxu3 %v1274_v25  ;;  %598 = vmatmul.f32.gmra.mxu2 %v252_v4 }
  0xae   :  { %485 = vmatmul.f32.gmra.mxu1 %v252_v4 }
  0xb1   :  { %1107 = vmatpush.xpose.msra.mxu3 %v1280_v28  ;;  %v260_v28 = vld [vmem:[#allocation3 + $0xa0] sm:$0xff] }
  0xb4   :  { %536 = vmatmul.f32.gmra.mxu3 %v1348_v58  ;;  %375 = vmatmul.f32.gmra.mxu0 %v253_v5 }
  0xb5   :  { %1108 = vmatpush.xpose.msra.mxu3 %v1286_v31  ;;  %601 = vmatmul.f32.gmra.mxu2 %v253_v5 }
  0xb6   :  { %488 = vmatmul.f32.gmra.mxu1 %v253_v5 }
  0xb9   :  { %1109 = vmatpush.xpose.msra.mxu3 %v1292_v34 }
  0xbc   :  { %539 = vmatmul.f32.gmra.mxu3 %v1353_v60  ;;  %378 = vmatmul.f32.gmra.mxu0 %v254_v6 }
  0xbd   :  { %1110 = vmatpush.xpose.msra.mxu3 %v1298_v37  ;;  %604 = vmatmul.f32.gmra.mxu2 %v254_v6 }
  0xbe   :  { %491 = vmatmul.f32.gmra.mxu1 %v254_v6 }
  0xc1   :  { %1111 = vmatpush.xpose.msra.mxu3 %v1304_v40 }
  0xc4   :  { %542 = vmatmul.f32.gmra.mxu3 %v1358_v62  ;;  %381 = vmatmul.f32.gmra.mxu0 %v255_v7 }
  0xc5   :  { %1112 = vmatpush.xpose.msra.mxu3 %v1310_v43  ;;  %607 = vmatmul.f32.gmra.mxu2 %v255_v7  ;;  %v263_v43 = vld [vmem:[#allocation3 + $0xb8] sm:$0xff] }
  0xc6   :  { %494 = vmatmul.f32.gmra.mxu1 %v255_v7 }
  0xc9   :  { %1113 = vmatpush.xpose.msra.mxu3 %v1316_v46  ;;  %v337_v9 = vpop.f32.mrf.mxu0 }
  0xca   :  { %950 = vst [vmem:[#allocation8] sm:$0xff] %v337_v9 }
  0xcb   :  { %v450_v10 = vpop.f32.mrf.mxu1 }
  0xcc   :  { %634 = vmatmul.f32.vlgmr.msra.gmra.mxu3 %v1322_v48  ;;  %951 = vst [vmem:[#allocation8 + $0x8] sm:$0xff] %v450_v10  ;;  %384 = vmatmul.f32.gmra.mxu0 %v256_v8 }
  0xcd   :  { %610 = vmatmul.f32.gmra.mxu2 %v256_v8 }
  0xce   :  { %497 = vmatmul.f32.gmra.mxu1 %v256_v8 }
  0xcf   :  { %v409_v11 = vpop.f32.mrf.mxu3 }
  0xd0   :  { %v563_v12 = vpop.f32.mrf.mxu2  ;;  %1022 = vst [vmem:[#allocation8 + $0x240] sm:$0xff] %v409_v11 }
  0xd1   :  { %952 = vst [vmem:[#allocation8 + $0x10] sm:$0xff] %v563_v12  ;;  %v340_v14 = vpop.f32.mrf.mxu0 }
  0xd2   :  { %953 = vst [vmem:[#allocation8 + $0x18] sm:$0xff] %v340_v14 }
  0xd3   :  { %v453_v15 = vpop.f32.mrf.mxu1 }
  0xd4   :  { %637 = vmatmul.f32.gmra.mxu3 %v1328_v50  ;;  %954 = vst [vmem:[#allocation8 + $0x20] sm:$0xff] %v453_v15  ;;  %387 = vmatmul.f32.gmra.mxu0 %v257_v13 }
  0xd5   :  { %613 = vmatmul.f32.gmra.mxu2 %v257_v13 }
  0xd6   :  { %500 = vmatmul.f32.gmra.mxu1 %v257_v13 }
  0xd7   :  { %v412_v16 = vpop.f32.mrf.mxu3 }
  0xd8   :  { %v566_v17 = vpop.f32.mrf.mxu2  ;;  %1025 = vst [vmem:[#allocation8 + $0x258] sm:$0xff] %v412_v16 }
  0xd9   :  { %955 = vst [vmem:[#allocation8 + $0x28] sm:$0xff] %v566_v17  ;;  %v343_v19 = vpop.f32.mrf.mxu0 }
  0xda   :  { %956 = vst [vmem:[#allocation8 + $0x30] sm:$0xff] %v343_v19 }
  0xdb   :  { %v456_v20 = vpop.f32.mrf.mxu1 }
  0xdc   :  { %640 = vmatmul.f32.gmra.mxu3 %v1333_v52  ;;  %957 = vst [vmem:[#allocation8 + $0x38] sm:$0xff] %v456_v20  ;;  %390 = vmatmul.f32.gmra.mxu0 %v258_v18 }
  0xdd   :  { %616 = vmatmul.f32.gmra.mxu2 %v258_v18 }
  0xde   :  { %503 = vmatmul.f32.gmra.mxu1 %v258_v18 }
  0xdf   :  { %v415_v21 = vpop.f32.mrf.mxu3 }
  0xe0   :  { %v569_v22 = vpop.f32.mrf.mxu2  ;;  %1028 = vst [vmem:[#allocation8 + $0x270] sm:$0xff] %v415_v21 }
  0xe1   :  { %958 = vst [vmem:[#allocation8 + $0x40] sm:$0xff] %v569_v22  ;;  %v346_v24 = vpop.f32.mrf.mxu0 }
  0xe2   :  { %959 = vst [vmem:[#allocation8 + $0x48] sm:$0xff] %v346_v24 }
  0xe3   :  { %v459_v25 = vpop.f32.mrf.mxu1 }
  0xe4   :  { %643 = vmatmul.f32.gmra.mxu3 %v1338_v54  ;;  %960 = vst [vmem:[#allocation8 + $0x50] sm:$0xff] %v459_v25  ;;  %393 = vmatmul.f32.gmra.mxu0 %v259_v23 }
  0xe5   :  { %619 = vmatmul.f32.gmra.mxu2 %v259_v23 }
  0xe6   :  { %506 = vmatmul.f32.gmra.mxu1 %v259_v23 }
  0xe7   :  { %v418_v26 = vpop.f32.mrf.mxu3 }
  0xe8   :  { %v572_v27 = vpop.f32.mrf.mxu2  ;;  %1031 = vst [vmem:[#allocation8 + $0x288] sm:$0xff] %v418_v26 }
  0xe9   :  { %961 = vst [vmem:[#allocation8 + $0x58] sm:$0xff] %v572_v27  ;;  %v349_v29 = vpop.f32.mrf.mxu0 }
  0xea   :  { %962 = vst [vmem:[#allocation8 + $0x60] sm:$0xff] %v349_v29 }
  0xeb   :  { %v462_v30 = vpop.f32.mrf.mxu1 }
  0xec   :  { %646 = vmatmul.f32.gmra.mxu3 %v1343_v56  ;;  %963 = vst [vmem:[#allocation8 + $0x68] sm:$0xff] %v462_v30  ;;  %396 = vmatmul.f32.gmra.mxu0 %v260_v28 }
  0xed   :  { %622 = vmatmul.f32.gmra.mxu2 %v260_v28 }
  0xee   :  { %509 = vmatmul.f32.gmra.mxu1 %v260_v28 }
  0xef   :  { %v421_v31 = vpop.f32.mrf.mxu3 }
  0xf0   :  { %v575_v32 = vpop.f32.mrf.mxu2  ;;  %1034 = vst [vmem:[#allocation8 + $0x2a0] sm:$0xff] %v421_v31 }
  0xf1   :  { %964 = vst [vmem:[#allocation8 + $0x70] sm:$0xff] %v575_v32  ;;  %v352_v34 = vpop.f32.mrf.mxu0 }
  0xf2   :  { %965 = vst [vmem:[#allocation8 + $0x78] sm:$0xff] %v352_v34 }
  0xf3   :  { %v465_v35 = vpop.f32.mrf.mxu1 }
  0xf4   :  { %649 = vmatmul.f32.gmra.mxu3 %v1348_v58  ;;  %966 = vst [vmem:[#allocation8 + $0x80] sm:$0xff] %v465_v35  ;;  %399 = vmatmul.f32.gmra.mxu0 %v261_v33 }
  0xf5   :  { %625 = vmatmul.f32.gmra.mxu2 %v261_v33 }
  0xf6   :  { %512 = vmatmul.f32.gmra.mxu1 %v261_v33 }
  0xf7   :  { %v424_v36 = vpop.f32.mrf.mxu3 }
  0xf8   :  { %v578_v37 = vpop.f32.mrf.mxu2  ;;  %1037 = vst [vmem:[#allocation8 + $0x2b8] sm:$0xff] %v424_v36 }
  0xf9   :  { %967 = vst [vmem:[#allocation8 + $0x88] sm:$0xff] %v578_v37  ;;  %v355_v39 = vpop.f32.mrf.mxu0 }
  0xfa   :  { %968 = vst [vmem:[#allocation8 + $0x90] sm:$0xff] %v355_v39 }
  0xfb   :  { %v468_v40 = vpop.f32.mrf.mxu1 }
  0xfc   :  { %652 = vmatmul.f32.gmra.mxu3 %v1353_v60  ;;  %969 = vst [vmem:[#allocation8 + $0x98] sm:$0xff] %v468_v40  ;;  %402 = vmatmul.f32.gmra.mxu0 %v262_v38 }
  0xfd   :  { %628 = vmatmul.f32.gmra.mxu2 %v262_v38 }
  0xfe   :  { %515 = vmatmul.f32.gmra.mxu1 %v262_v38 }
  0xff   :  { %v427_v41 = vpop.f32.mrf.mxu3 }
 0x100   :  { %v581_v42 = vpop.f32.mrf.mxu2  ;;  %1040 = vst [vmem:[#allocation8 + $0x2d0] sm:$0xff] %v427_v41 }
 0x101   :  { %970 = vst [vmem:[#allocation8 + $0xa0] sm:$0xff] %v581_v42  ;;  %v358_v44 = vpop.f32.mrf.mxu0 }
 0x102   :  { %971 = vst [vmem:[#allocation8 + $0xa8] sm:$0xff] %v358_v44 }
 0x103   :  { %v471_v45 = vpop.f32.mrf.mxu1 }
 0x104   :  { %655 = vmatmul.f32.gmra.mxu3 %v1358_v62  ;;  %972 = vst [vmem:[#allocation8 + $0xb0] sm:$0xff] %v471_v45  ;;  %405 = vmatmul.f32.gmra.mxu0 %v263_v43 }
 0x105   :  { %631 = vmatmul.f32.gmra.mxu2 %v263_v43 }
 0x106   :  { %518 = vmatmul.f32.gmra.mxu1 %v263_v43 }
 0x107   :  { %v430_v46 = vpop.f32.mrf.mxu3 }
 0x108   :  { %v584_v47 = vpop.f32.mrf.mxu2  ;;  %1043 = vst [vmem:[#allocation8 + $0x2e8] sm:$0xff] %v430_v46 }
 0x109   :  { %973 = vst [vmem:[#allocation8 + $0xb8] sm:$0xff] %v584_v47  ;;  %v361_v48 = vpop.f32.mrf.mxu0 }
 0x10a   :  { %974 = vst [vmem:[#allocation8 + $0xc0] sm:$0xff] %v361_v48 }
 0x10b   :  { %v474_v49 = vpop.f32.mrf.mxu1 }
 0x10c   :  { %975 = vst [vmem:[#allocation8 + $0xc8] sm:$0xff] %v474_v49 }
 0x10f   :  { %v522_v50 = vpop.f32.mrf.mxu3 }
 0x110   :  { %v587_v51 = vpop.f32.mrf.mxu2  ;;  %1023 = vst [vmem:[#allocation8 + $0x248] sm:$0xff] %v522_v50 }
 0x111   :  { %976 = vst [vmem:[#allocation8 + $0xd0] sm:$0xff] %v587_v51  ;;  %v364_v52 = vpop.f32.mrf.mxu0 }
 0x112   :  { %977 = vst [vmem:[#allocation8 + $0xd8] sm:$0xff] %v364_v52 }
 0x113   :  { %v477_v53 = vpop.f32.mrf.mxu1 }
 0x114   :  { %978 = vst [vmem:[#allocation8 + $0xe0] sm:$0xff] %v477_v53 }
 0x117   :  { %v525_v54 = vpop.f32.mrf.mxu3 }
 0x118   :  { %v590_v55 = vpop.f32.mrf.mxu2  ;;  %1026 = vst [vmem:[#allocation8 + $0x260] sm:$0xff] %v525_v54 }
 0x119   :  { %979 = vst [vmem:[#allocation8 + $0xe8] sm:$0xff] %v590_v55  ;;  %v367_v56 = vpop.f32.mrf.mxu0 }
 0x11a   :  { %980 = vst [vmem:[#allocation8 + $0xf0] sm:$0xff] %v367_v56 }
 0x11b   :  { %v480_v57 = vpop.f32.mrf.mxu1 }
 0x11c   :  { %981 = vst [vmem:[#allocation8 + $0xf8] sm:$0xff] %v480_v57 }
 0x11f   :  { %v528_v58 = vpop.f32.mrf.mxu3 }
 0x120   :  { %v593_v59 = vpop.f32.mrf.mxu2  ;;  %1029 = vst [vmem:[#allocation8 + $0x278] sm:$0xff] %v528_v58 }
 0x121   :  { %982 = vst [vmem:[#allocation8 + $0x100] sm:$0xff] %v593_v59  ;;  %v370_v60 = vpop.f32.mrf.mxu0 }
 0x122   :  { %983 = vst [vmem:[#allocation8 + $0x108] sm:$0xff] %v370_v60 }
 0x123   :  { %v483_v61 = vpop.f32.mrf.mxu1 }
 0x124   :  { %984 = vst [vmem:[#allocation8 + $0x110] sm:$0xff] %v483_v61 }
 0x127   :  { %v531_v62 = vpop.f32.mrf.mxu3 }
 0x128   :  { %v596_v63 = vpop.f32.mrf.mxu2  ;;  %1032 = vst [vmem:[#allocation8 + $0x290] sm:$0xff] %v531_v62 }
 0x129   :  { %985 = vst [vmem:[#allocation8 + $0x118] sm:$0xff] %v596_v63  ;;  %v373_v0 = vpop.f32.mrf.mxu0 }
 0x12a   :  { %986 = vst [vmem:[#allocation8 + $0x120] sm:$0xff] %v373_v0 }
 0x12b   :  { %v486_v2 = vpop.f32.mrf.mxu1 }
 0x12c   :  { %987 = vst [vmem:[#allocation8 + $0x128] sm:$0xff] %v486_v2 }
 0x12f   :  { %v534_v1 = vpop.f32.mrf.mxu3 }
 0x130   :  { %v599_v3 = vpop.f32.mrf.mxu2  ;;  %1035 = vst [vmem:[#allocation8 + $0x2a8] sm:$0xff] %v534_v1 }
 0x131   :  { %988 = vst [vmem:[#allocation8 + $0x130] sm:$0xff] %v599_v3  ;;  %v376_v4 = vpop.f32.mrf.mxu0 }
 0x132   :  { %989 = vst [vmem:[#allocation8 + $0x138] sm:$0xff] %v376_v4 }
 0x133   :  { %v489_v5 = vpop.f32.mrf.mxu1 }
 0x134   :  { %990 = vst [vmem:[#allocation8 + $0x140] sm:$0xff] %v489_v5 }
 0x137   :  { %v537_v6 = vpop.f32.mrf.mxu3 }
 0x138   :  { %v602_v7 = vpop.f32.mrf.mxu2  ;;  %1038 = vst [vmem:[#allocation8 + $0x2c0] sm:$0xff] %v537_v6 }
 0x139   :  { %991 = vst [vmem:[#allocation8 + $0x148] sm:$0xff] %v602_v7  ;;  %v379_v8 = vpop.f32.mrf.mxu0 }
 0x13a   :  { %992 = vst [vmem:[#allocation8 + $0x150] sm:$0xff] %v379_v8 }
 0x13b   :  { %v492_v9 = vpop.f32.mrf.mxu1 }
 0x13c   :  { %993 = vst [vmem:[#allocation8 + $0x158] sm:$0xff] %v492_v9 }
 0x13f   :  { %v540_v10 = vpop.f32.mrf.mxu3 }
 0x140   :  { %v605_v11 = vpop.f32.mrf.mxu2  ;;  %1041 = vst [vmem:[#allocation8 + $0x2d8] sm:$0xff] %v540_v10 }
 0x141   :  { %994 = vst [vmem:[#allocation8 + $0x160] sm:$0xff] %v605_v11  ;;  %v382_v12 = vpop.f32.mrf.mxu0 }
 0x142   :  { %995 = vst [vmem:[#allocation8 + $0x168] sm:$0xff] %v382_v12 }
 0x143   :  { %v495_v13 = vpop.f32.mrf.mxu1 }
 0x144   :  { %996 = vst [vmem:[#allocation8 + $0x170] sm:$0xff] %v495_v13 }
 0x147   :  { %v543_v14 = vpop.f32.mrf.mxu3 }
 0x148   :  { %v608_v15 = vpop.f32.mrf.mxu2  ;;  %1044 = vst [vmem:[#allocation8 + $0x2f0] sm:$0xff] %v543_v14 }
 0x149   :  { %997 = vst [vmem:[#allocation8 + $0x178] sm:$0xff] %v608_v15  ;;  %v385_v16 = vpop.f32.mrf.mxu0 }
 0x14a   :  { %998 = vst [vmem:[#allocation8 + $0x180] sm:$0xff] %v385_v16 }
 0x14b   :  { %v498_v17 = vpop.f32.mrf.mxu1 }
 0x14c   :  { %999 = vst [vmem:[#allocation8 + $0x188] sm:$0xff] %v498_v17 }
 0x14f   :  { %v635_v19 = vpop.f32.mrf.mxu3 }
 0x150   :  { %v611_v18 = vpop.f32.mrf.mxu2  ;;  %1024 = vst [vmem:[#allocation8 + $0x250] sm:$0xff] %v635_v19 }
 0x151   :  { %1000 = vst [vmem:[#allocation8 + $0x190] sm:$0xff] %v611_v18  ;;  %v388_v20 = vpop.f32.mrf.mxu0 }
 0x152   :  { %1001 = vst [vmem:[#allocation8 + $0x198] sm:$0xff] %v388_v20 }
 0x153   :  { %v501_v21 = vpop.f32.mrf.mxu1 }
 0x154   :  { %1002 = vst [vmem:[#allocation8 + $0x1a0] sm:$0xff] %v501_v21 }
 0x157   :  { %v638_v23 = vpop.f32.mrf.mxu3 }
 0x158   :  { %v614_v22 = vpop.f32.mrf.mxu2  ;;  %1027 = vst [vmem:[#allocation8 + $0x268] sm:$0xff] %v638_v23 }
 0x159   :  { %1003 = vst [vmem:[#allocation8 + $0x1a8] sm:$0xff] %v614_v22  ;;  %v391_v24 = vpop.f32.mrf.mxu0 }
 0x15a   :  { %1004 = vst [vmem:[#allocation8 + $0x1b0] sm:$0xff] %v391_v24 }
 0x15b   :  { %v504_v25 = vpop.f32.mrf.mxu1 }
 0x15c   :  { %1005 = vst [vmem:[#allocation8 + $0x1b8] sm:$0xff] %v504_v25 }
 0x15f   :  { %v641_v27 = vpop.f32.mrf.mxu3 }
 0x160   :  { %v617_v26 = vpop.f32.mrf.mxu2  ;;  %1030 = vst [vmem:[#allocation8 + $0x280] sm:$0xff] %v641_v27 }
 0x161   :  { %1006 = vst [vmem:[#allocation8 + $0x1c0] sm:$0xff] %v617_v26  ;;  %v394_v28 = vpop.f32.mrf.mxu0 }
 0x162   :  { %1007 = vst [vmem:[#allocation8 + $0x1c8] sm:$0xff] %v394_v28 }
 0x163   :  { %v507_v29 = vpop.f32.mrf.mxu1 }
 0x164   :  { %1008 = vst [vmem:[#allocation8 + $0x1d0] sm:$0xff] %v507_v29 }
 0x167   :  { %v644_v31 = vpop.f32.mrf.mxu3 }
 0x168   :  { %v620_v30 = vpop.f32.mrf.mxu2  ;;  %1033 = vst [vmem:[#allocation8 + $0x298] sm:$0xff] %v644_v31 }
 0x169   :  { %1009 = vst [vmem:[#allocation8 + $0x1d8] sm:$0xff] %v620_v30  ;;  %v397_v32 = vpop.f32.mrf.mxu0 }
 0x16a   :  { %1010 = vst [vmem:[#allocation8 + $0x1e0] sm:$0xff] %v397_v32 }
 0x16b   :  { %v510_v33 = vpop.f32.mrf.mxu1 }
 0x16c   :  { %1011 = vst [vmem:[#allocation8 + $0x1e8] sm:$0xff] %v510_v33 }
 0x16f   :  { %v647_v35 = vpop.f32.mrf.mxu3 }
 0x170   :  { %v623_v34 = vpop.f32.mrf.mxu2  ;;  %1036 = vst [vmem:[#allocation8 + $0x2b0] sm:$0xff] %v647_v35 }
 0x171   :  { %1012 = vst [vmem:[#allocation8 + $0x1f0] sm:$0xff] %v623_v34  ;;  %v400_v36 = vpop.f32.mrf.mxu0 }
 0x172   :  { %1013 = vst [vmem:[#allocation8 + $0x1f8] sm:$0xff] %v400_v36 }
 0x173   :  { %v513_v37 = vpop.f32.mrf.mxu1 }
 0x174   :  { %1014 = vst [vmem:[#allocation8 + $0x200] sm:$0xff] %v513_v37 }
 0x177   :  { %v650_v39 = vpop.f32.mrf.mxu3 }
 0x178   :  { %v626_v38 = vpop.f32.mrf.mxu2  ;;  %1039 = vst [vmem:[#allocation8 + $0x2c8] sm:$0xff] %v650_v39 }
 0x179   :  { %1015 = vst [vmem:[#allocation8 + $0x208] sm:$0xff] %v626_v38  ;;  %v403_v40 = vpop.f32.mrf.mxu0 }
 0x17a   :  { %1016 = vst [vmem:[#allocation8 + $0x210] sm:$0xff] %v403_v40 }
 0x17b   :  { %v516_v41 = vpop.f32.mrf.mxu1 }
 0x17c   :  { %1017 = vst [vmem:[#allocation8 + $0x218] sm:$0xff] %v516_v41 }
 0x17f   :  { %v653_v43 = vpop.f32.mrf.mxu3 }
 0x180   :  { %v629_v42 = vpop.f32.mrf.mxu2  ;;  %1042 = vst [vmem:[#allocation8 + $0x2e0] sm:$0xff] %v653_v43 }
 0x181   :  { %1018 = vst [vmem:[#allocation8 + $0x220] sm:$0xff] %v629_v42  ;;  %v406_v44 = vpop.f32.mrf.mxu0 }
 0x182   :  { %1019 = vst [vmem:[#allocation8 + $0x228] sm:$0xff] %v406_v44 }
 0x183   :  { %v519_v45 = vpop.f32.mrf.mxu1 }
 0x184   :  { %1020 = vst [vmem:[#allocation8 + $0x230] sm:$0xff] %v519_v45 }
 0x187   :  { %v656_v47 = vpop.f32.mrf.mxu3 }
 0x188   :  { %v632_v46 = vpop.f32.mrf.mxu2  ;;  %1045 = vst [vmem:[#allocation8 + $0x2f8] sm:$0xff] %v656_v47 }
 0x189   :  { %1021 = vst [vmem:[#allocation8 + $0x238] sm:$0xff] %v632_v46 }
 0x18a   :  { %1058 = dma.vmem_to_hbm [thread:$0]  %s1051_s1, 12288, %s1053_s23, [#allocation5], %s1204_s24, %s1204_s24, %s1205_s25  }
 0x18b   :  { %1197 = dma.done.wait [#allocation5], 12288  }
 0x18c   :  { %1198 = vsyncadd [#allocation5], 4294955008 }
 0x18d   :  { %1063 = vsyncpa [#allocation4], 1 }
 0x18e   :  { %1064 = vsyncpa [#allocation7], 1 }
 0x18f   :  { %1065 = vsyncpa [#allocation5], 1 }

</bundles_post_ra>
